<compile_context>
chip_gen: v7x
topology: tpu7x:2x2x1
jax: 0.10.0
libtpu: 0.0.40
codegen_flags: <defaults>
</compile_context>

<pallas_src>
import functools
import math

import jax
import jax.numpy as jnp
from jax.experimental import pallas as pl
from jax.experimental.pallas import tpu as pltpu

EPSILON = 1e-8
MOMENTUM = 0.1

_MIB = 1024 * 1024


def _vmem_limit_bytes():
    """Scoped-VMEM budget: ~3/4 of physical VMEM (96 MiB v5e/v6e, 48 MiB v7x)."""
    try:
        cap = int(getattr(pltpu.get_tpu_info(), "vmem_capacity_bytes"))
    except Exception:
        cap = 64 * _MIB  # conservative fallback that also fits v7x
    return max(32 * _MIB, (cap * 3) // 4)


def _tile_rows(total_rows, row_bytes, budget_bytes, sublane):
    """Largest row-tile (multiple of `sublane`) fitting `budget_bytes`."""
    rows = max(budget_bytes // max(row_bytes, 1), 1)
    rows = max(sublane, (rows // sublane) * sublane)
    if rows >= total_rows:
        return total_rows  # single tile covering the full extent (always legal)
    return rows


# -------- fused path: whole X resident in VMEM, one read + one write --------
def _fused_kernel(x_ref, nv_ref, beta_ref, gamma_ref, rm_ref, rv_ref,
                  out_ref, new_rm_ref, new_rv_ref):
    x = x_ref[...].astype(jnp.float32)                     # [B, N, D]
    inv_nv = 1.0 / (nv_ref[...] + EPSILON)                 # [B, 1]
    pbm = jnp.sum(x, axis=1) * inv_nv                      # [B, D]
    bm = jnp.mean(pbm, axis=0, keepdims=True)              # [1, D]
    xc = x - bm[None]                                      # [B, N, D]
    pbv = jnp.sum(xc * xc, axis=1) * inv_nv                # [B, D]
    bv = jnp.mean(pbv, axis=0, keepdims=True)              # [1, D]
    gamma = gamma_ref[...]
    scale = gamma / (jnp.sqrt(bv) + EPSILON)               # [1, D]
    offset = beta_ref[...] * gamma                         # [1, D]
    out_ref[...] = (xc * scale[None] + offset[None]).astype(out_ref.dtype)
    new_rm_ref[...] = MOMENTUM * bm + (1.0 - MOMENTUM) * rm_ref[...]
    new_rv_ref[...] = MOMENTUM * bv + (1.0 - MOMENTUM) * rv_ref[...]


# ---- phase 1 (tiled path): per-batch sum(x) / sum(x*x) over vertex tiles ----
def _stats_kernel(x_ref, sumx_ref, sumx2_ref, *, n_rows, tile_rows, need_mask):
    @pl.when(pl.program_id(2) == 0)
    def _():
        sumx_ref[...] = jnp.zeros_like(sumx_ref)
        sumx2_ref[...] = jnp.zeros_like(sumx2_ref)

    x = x_ref[0].astype(jnp.float32)                       # [tile_rows, C]
    if need_mask:
        # Logical (unclamped) tile position; zero out rows past the real extent.
        row0 = (pl.program_id(1) * pl.num_programs(2) + pl.program_id(2)) * tile_rows
        rid = jax.lax.broadcasted_iota(jnp.int32, x.shape, 0) + row0
        x = jnp.where(rid < n_rows, x, 0.0)
    sumx_ref[...] += jnp.sum(x, axis=0, keepdims=True)     # [1, C]
    sumx2_ref[...] += jnp.sum(x * x, axis=0, keepdims=True)


# ---- phase 3 (tiled path): elementwise normalize, out = x*scale + offset ----
def _normalize_kernel(x_ref, scale_ref, offset_ref, out_ref):
    x = x_ref[...].astype(jnp.float32)
    out_ref[...] = (x * scale_ref[...] + offset_ref[...]).astype(out_ref.dtype)


def padded_batchnorm(x, masks, beta, gamma, running_mean, running_variance,
                     *, force_tiled=False, _phase1_rows=None, _phase3_rows=None):
    """x: [B,N,D], masks: [B,N,N], params/stats: [D].  Returns (out, new_rm, new_rv)."""
    B, N, D = x.shape
    f32 = jnp.float32
    itemsize = jnp.dtype(x.dtype).itemsize
    sublane = max(8, 32 // itemsize)           # 8 rows f32, 16 bf16, 32 int8/fp8

    beta2 = beta.reshape(1, D).astype(f32)
    gamma2 = gamma.reshape(1, D).astype(f32)
    rm2 = running_mean.reshape(1, D).astype(f32)
    rv2 = running_variance.reshape(1, D).astype(f32)

    # Valid-vertex count from the mask diagonal only (B*N elements instead of
    # streaming the full O(B*N^2) masks).  For the standard outer-product
    # padding mask, masks[b,i,i] == max_j masks[b,i,j] exactly.
    # TODO(synk): if masks is not an outer-product validity mask, replace this
    # with a tiled max-reduction over the last mask axis.
    valid = jnp.diagonal(masks, axis1=-2, axis2=-1).astype(f32)   # [B, N]
    nv = jnp.sum(valid, axis=-1, keepdims=True)                   # [B, 1]

    vmem_limit = _vmem_limit_bytes()

    # ------------------- fused single-kernel path -------------------
    elems = B * N * D
    fused_bytes = elems * (2 * itemsize + 3 * 4) + 64 * 1024   # in + out + f32 temps
    if not force_tiled and fused_bytes <= (vmem_limit * 3) // 5:
        vmem = pl.BlockSpec(memory_space=pltpu.MemorySpace.VMEM)
        out, new_rm, new_rv = pl.pallas_call(
            _fused_kernel,
            out_shape=(jax.ShapeDtypeStruct((B, N, D), x.dtype),
                       jax.ShapeDtypeStruct((1, D), f32),
                       jax.ShapeDtypeStruct((1, D), f32)),
            in_specs=[vmem] * 6,
            out_specs=(vmem,) * 3,
            compiler_params=pltpu.CompilerParams(vmem_limit_bytes=vmem_limit),
        )(x, nv, beta2, gamma2, rm2, rv2)
        return out, new_rm.reshape(D), new_rv.reshape(D)

    # ------------------------- tiled path -------------------------
    # Lane-packing factor: smallest g such that (g*D) % 128 == 0.
    g = math.lcm(D, 128) // D

    # ---- phase 1: single HBM pass over X -> per-batch sum(x), sum(x*x) ----
    g1 = g if (g > 1 and N % g == 0) else 1
    n_rows1, c1 = N // g1, D * g1
    x1 = x.reshape(B, n_rows1, c1)                    # contiguous view
    p1_budget = min(16 * _MIB, vmem_limit // 3)       # only the input double-buffers
    tr1 = _phase1_rows or _tile_rows(n_rows1, c1 * itemsize, p1_budget, sublane)
    n_tiles1 = pl.cdiv(n_rows1, tr1)
    P = 2 if (B == 1 and n_tiles1 >= 2) else 1        # keep both v7x TCs busy at B==1
    T = pl.cdiv(n_tiles1, P)
    need_mask = (P * T * tr1) != n_rows1
    max_blk = n_tiles1 - 1

    sum_x_raw, sum_x2_raw = pl.pallas_call(
        functools.partial(_stats_kernel, n_rows=n_rows1, tile_rows=tr1,
                          need_mask=need_mask),
        out_shape=(jax.ShapeDtypeStruct((B * P, c1), f32),
                   jax.ShapeDtypeStruct((B * P, c1), f32)),
        grid=(B, P, T),
        in_specs=[pl.BlockSpec(
            (1, tr1, c1),
            lambda b, p, t: (b, jnp.minimum(p * T + t, max_blk), 0))],
        out_specs=(pl.BlockSpec((1, c1), lambda b, p, t: (b * P + p, 0)),
                   pl.BlockSpec((1, c1), lambda b, p, t: (b * P + p, 0))),
        compiler_params=pltpu.CompilerParams(
            dimension_semantics=("parallel", "parallel", "arbitrary"),
            vmem_limit_bytes=vmem_limit),
    )(x1)
    # Fold the P partial sums and the g1 packed vertex-groups back to [B, D].
    sum_x = sum_x_raw.reshape(B, P * g1, D).sum(axis=1)
    sum_x2 = sum_x2_raw.reshape(B, P * g1, D).sum(axis=1)

    # ---- finalize (tiny, plain jnp): fold stats into per-feature scale/offset ----
    inv_nv = 1.0 / (nv + EPSILON)                      # [B, 1]
    pbm = sum_x * inv_nv                               # padded per-batch mean
    bm = jnp.mean(pbm, axis=0, keepdims=True)          # [1, D] batch mean
    # sum over ALL N rows of (x - bm)^2 = sum_x2 - 2*bm*sum_x + N*bm^2; only the
    # denominator uses the valid count -- exactly the torch module's semantics.
    # TODO(synk): single-pass variance can cancel catastrophically if |mean| >> std;
    # switch to a shifted/two-pass accumulation for badly centered inputs.
    pbv = (sum_x2 - 2.0 * bm * sum_x + float(N) * bm * bm) * inv_nv
    bv = jnp.mean(pbv, axis=0, keepdims=True)          # [1, D] batch variance
    scale = gamma2 / (jnp.sqrt(bv) + EPSILON)
    offset = beta2 * gamma2 - bm * scale
    new_rm = MOMENTUM * bm + (1.0 - MOMENTUM) * rm2
    new_rv = MOMENTUM * bv + (1.0 - MOMENTUM) * rv2

    # ---- phase 3: lane-dense elementwise normalize ----
    g3 = g if (g > 1 and (B * N) % g == 0) else 1
    R, C = (B * N) // g3, D * g3
    x3 = x.reshape(R, C)                               # contiguous view
    scale3 = jnp.tile(scale, (1, g3)) if g3 > 1 else scale
    offset3 = jnp.tile(offset, (1, g3)) if g3 > 1 else offset

    p3_budget = min(6 * _MIB, vmem_limit // 10)        # in + out both double-buffer
    tr3 = _phase3_rows or _tile_rows(R, C * itemsize, p3_budget, sublane)
    out3 = pl.pallas_call(
        _normalize_kernel,
        out_shape=jax.ShapeDtypeStruct((R, C), x.dtype),
        grid=(pl.cdiv(R, tr3),),
        in_specs=[pl.BlockSpec((tr3, C), lambda r: (r, 0)),
                  pl.BlockSpec((1, C), lambda r: (0, 0)),
                  pl.BlockSpec((1, C), lambda r: (0, 0))],
        out_specs=pl.BlockSpec((tr3, C), lambda r: (r, 0)),
        compiler_params=pltpu.CompilerParams(
            dimension_semantics=("parallel",),
            vmem_limit_bytes=vmem_limit),
    )(x3, scale3, offset3)

    return out3.reshape(B, N, D), new_rm.reshape(D), new_rv.reshape(D)


def _reference(x, masks, beta, gamma, rm, rv):
    # pure-JAX reference matching the torch module (training mode, two-pass)
    valid = jnp.max(masks, axis=-1, keepdims=True)
    num_v = jnp.sum(valid, axis=-2, keepdims=True)
    pbm = jnp.sum(x, axis=-2, keepdims=True) / (num_v + EPSILON)
    bm = jnp.mean(pbm, axis=0, keepdims=True)
    xc = x - bm
    pbv = jnp.sum(xc ** 2, axis=-2, keepdims=True) / (num_v + EPSILON)
    bv = jnp.mean(pbv, axis=0, keepdims=True)
    xs = xc / (jnp.sqrt(bv) + EPSILON)
    out = (xs + beta) * gamma
    new_rm = MOMENTUM * jnp.squeeze(bm) + (1 - MOMENTUM) * rm
    new_rv = MOMENTUM * jnp.squeeze(bv) + (1 - MOMENTUM) * rv
    return out, new_rm, new_rv


if __name__ == "__main__":
    key = jax.random.PRNGKey(0)
    k1, k2 = jax.random.split(key)

    def make_inputs(k, B, N, D, n_valid):
        x = jax.random.normal(k, (B, N, D), dtype=jnp.float32)
        vert = jnp.arange(N)
        validv = (vert[None, :] < jnp.asarray(n_valid)[:, None]).astype(jnp.float32)
        masks = validv[:, :, None] * validv[:, None, :]         # [B, N, N]
        beta = jnp.zeros((D,), jnp.float32)
        gamma = jnp.ones((D,), jnp.float32)
        rm = jnp.zeros((D,), jnp.float32)
        rv = jnp.ones((D,), jnp.float32)
        return x, masks, beta, gamma, rm, rv

    # 1) small shape -> fused single-kernel path
    args = make_inputs(k1, 2, 8, 32, [6, 5])
    out, new_rm, new_rv = padded_batchnorm(*args)
    jax.block_until_ready((out, new_rm, new_rv))
    ref_out, ref_rm, ref_rv = _reference(*args)
    assert jnp.allclose(out, ref_out, atol=1e-5, rtol=1e-5)
    assert jnp.allclose(new_rm, ref_rm, atol=1e-5, rtol=1e-5)
    assert jnp.allclose(new_rv, ref_rv, atol=1e-5, rtol=1e-5)

    # 2) force the tiled path with tiny tiles: exercises lane packing, the cdiv
    #    grid + tail masking, and the B==1 two-way vertex split (v7x megacore).
    args2 = make_inputs(k2, 1, 36, 32, [30])
    out2, rm2_, rv2_ = padded_batchnorm(*args2, force_tiled=True,
                                        _phase1_rows=8, _phase3_rows=8)
    jax.block_until_ready((out2, rm2_, rv2_))
    ref_out2, ref_rm2, ref_rv2 = _reference(*args2)
    assert jnp.allclose(out2, ref_out2, atol=1e-4, rtol=1e-4)
    assert jnp.allclose(rm2_, ref_rm2, atol=1e-5, rtol=1e-5)
    assert jnp.allclose(rv2_, ref_rv2, atol=1e-4, rtol=1e-4)

    print("KERNEL_OK")
</pallas_src>

<mosaic_0001>
module attributes {stable_mosaic.version = 11 : i64} {
  func.func @_fused_kernel(%arg0: memref<2x8x32xf32, #tpu.memory_space<vmem>>, %arg1: memref<2x1xf32, #tpu.memory_space<vmem>>, %arg2: memref<1x32xf32, #tpu.memory_space<vmem>>, %arg3: memref<1x32xf32, #tpu.memory_space<vmem>>, %arg4: memref<1x32xf32, #tpu.memory_space<vmem>>, %arg5: memref<1x32xf32, #tpu.memory_space<vmem>>, %arg6: memref<2x8x32xf32, #tpu.memory_space<vmem>>, %arg7: memref<1x32xf32, #tpu.memory_space<vmem>>, %arg8: memref<1x32xf32, #tpu.memory_space<vmem>>) attributes {dimension_semantics = [], scalar_prefetch = 0 : i64, scratch_operands = 0 : i64, tpu.core_type = #tpu.core_type<tc>} {
    %c0 = arith.constant 0 : index
    %c0_0 = arith.constant 0 : index
    %c0_1 = arith.constant 0 : index
    %0 = vector.load %arg0[%c0, %c0_0, %c0_1] : memref<2x8x32xf32, #tpu.memory_space<vmem>>, vector<2x8x32xf32>
    %c0_2 = arith.constant 0 : index
    %c0_3 = arith.constant 0 : index
    %1 = vector.load %arg1[%c0_2, %c0_3] : memref<2x1xf32, #tpu.memory_space<vmem>>, vector<2x1xf32>
    %cst = arith.constant 9.99999993E-9 : f32
    %2 = vector.broadcast %cst : f32 to vector<2x1xf32>
    %3 = arith.addf %1, %2 : vector<2x1xf32>
    %cst_4 = arith.constant 1.000000e+00 : f32
    %4 = vector.broadcast %cst_4 : f32 to vector<2x1xf32>
    %5 = arith.divf %4, %3 : vector<2x1xf32>
    %cst_5 = arith.constant dense<0.000000e+00> : vector<2x32xf32>
    %6 = vector.multi_reduction <add>, %0, %cst_5 [1] : vector<2x8x32xf32> to vector<2x32xf32>
    %7 = vector.broadcast %5 : vector<2x1xf32> to vector<2x32xf32>
    %8 = arith.mulf %6, %7 : vector<2x32xf32>
    %cst_6 = arith.constant dense<0.000000e+00> : vector<32xf32>
    %9 = vector.multi_reduction <add>, %8, %cst_6 [0] : vector<2x32xf32> to vector<32xf32>
    %10 = vector.shape_cast %9 : vector<32xf32> to vector<1x32xf32>
    %cst_7 = arith.constant 2.000000e+00 : f32
    %11 = vector.broadcast %cst_7 : f32 to vector<1x32xf32>
    %12 = arith.divf %10, %11 : vector<1x32xf32>
    %13 = vector.shape_cast %12 : vector<1x32xf32> to vector<1x1x32xf32>
    %14 = vector.broadcast %13 : vector<1x1x32xf32> to vector<2x8x32xf32>
    %15 = arith.subf %0, %14 : vector<2x8x32xf32>
    %16 = arith.mulf %15, %15 : vector<2x8x32xf32>
    %cst_8 = arith.constant dense<0.000000e+00> : vector<2x32xf32>
    %17 = vector.multi_reduction <add>, %16, %cst_8 [1] : vector<2x8x32xf32> to vector<2x32xf32>
    %18 = vector.broadcast %5 : vector<2x1xf32> to vector<2x32xf32>
    %19 = arith.mulf %17, %18 : vector<2x32xf32>
    %cst_9 = arith.constant dense<0.000000e+00> : vector<32xf32>
    %20 = vector.multi_reduction <add>, %19, %cst_9 [0] : vector<2x32xf32> to vector<32xf32>
    %21 = vector.shape_cast %20 : vector<32xf32> to vector<1x32xf32>
    %cst_10 = arith.constant 2.000000e+00 : f32
    %22 = vector.broadcast %cst_10 : f32 to vector<1x32xf32>
    %23 = arith.divf %21, %22 : vector<1x32xf32>
    %c0_11 = arith.constant 0 : index
    %c0_12 = arith.constant 0 : index
    %24 = vector.load %arg3[%c0_11, %c0_12] : memref<1x32xf32, #tpu.memory_space<vmem>>, vector<1x32xf32>
    %25 = math.sqrt %23 : vector<1x32xf32>
    %cst_13 = arith.constant 9.99999993E-9 : f32
    %26 = vector.broadcast %cst_13 : f32 to vector<1x32xf32>
    %27 = arith.addf %25, %26 : vector<1x32xf32>
    %28 = arith.divf %24, %27 : vector<1x32xf32>
    %c0_14 = arith.constant 0 : index
    %c0_15 = arith.constant 0 : index
    %29 = vector.load %arg2[%c0_14, %c0_15] : memref<1x32xf32, #tpu.memory_space<vmem>>, vector<1x32xf32>
    %30 = arith.mulf %29, %24 : vector<1x32xf32>
    %31 = vector.shape_cast %28 : vector<1x32xf32> to vector<1x1x32xf32>
    %32 = vector.broadcast %31 : vector<1x1x32xf32> to vector<2x8x32xf32>
    %33 = arith.mulf %15, %32 : vector<2x8x32xf32>
    %34 = vector.shape_cast %30 : vector<1x32xf32> to vector<1x1x32xf32>
    %35 = vector.broadcast %34 : vector<1x1x32xf32> to vector<2x8x32xf32>
    %36 = arith.addf %33, %35 : vector<2x8x32xf32>
    %c0_16 = arith.constant 0 : index
    %c0_17 = arith.constant 0 : index
    %c0_18 = arith.constant 0 : index
    %37 = vector.load %arg6[%c0_16, %c0_17, %c0_18] : memref<2x8x32xf32, #tpu.memory_space<vmem>>, vector<2x8x32xf32>
    tpu.vector_store %arg6[%c0_16, %c0_17, %c0_18], %36 {strides = array<i32>} : memref<2x8x32xf32, #tpu.memory_space<vmem>>, vector<2x8x32xf32>,
    %cst_19 = arith.constant 1.000000e-01 : f32
    %38 = vector.broadcast %cst_19 : f32 to vector<1x32xf32>
    %39 = arith.mulf %38, %12 : vector<1x32xf32>
    %c0_20 = arith.constant 0 : index
    %c0_21 = arith.constant 0 : index
    %40 = vector.load %arg4[%c0_20, %c0_21] : memref<1x32xf32, #tpu.memory_space<vmem>>, vector<1x32xf32>
    %cst_22 = arith.constant 0.899999976 : f32
    %41 = vector.broadcast %cst_22 : f32 to vector<1x32xf32>
    %42 = arith.mulf %41, %40 : vector<1x32xf32>
    %43 = arith.addf %39, %42 : vector<1x32xf32>
    %c0_23 = arith.constant 0 : index
    %c0_24 = arith.constant 0 : index
    %44 = vector.load %arg7[%c0_23, %c0_24] : memref<1x32xf32, #tpu.memory_space<vmem>>, vector<1x32xf32>
    tpu.vector_store %arg7[%c0_23, %c0_24], %43 {strides = array<i32>} : memref<1x32xf32, #tpu.memory_space<vmem>>, vector<1x32xf32>,
    %cst_25 = arith.constant 1.000000e-01 : f32
    %45 = vector.broadcast %cst_25 : f32 to vector<1x32xf32>
    %46 = arith.mulf %45, %23 : vector<1x32xf32>
    %c0_26 = arith.constant 0 : index
    %c0_27 = arith.constant 0 : index
    %47 = vector.load %arg5[%c0_26, %c0_27] : memref<1x32xf32, #tpu.memory_space<vmem>>, vector<1x32xf32>
    %cst_28 = arith.constant 0.899999976 : f32
    %48 = vector.broadcast %cst_28 : f32 to vector<1x32xf32>
    %49 = arith.mulf %48, %47 : vector<1x32xf32>
    %50 = arith.addf %46, %49 : vector<1x32xf32>
    %c0_29 = arith.constant 0 : index
    %c0_30 = arith.constant 0 : index
    %51 = vector.load %arg8[%c0_29, %c0_30] : memref<1x32xf32, #tpu.memory_space<vmem>>, vector<1x32xf32>
    tpu.vector_store %arg8[%c0_29, %c0_30], %50 {strides = array<i32>} : memref<1x32xf32, #tpu.memory_space<vmem>>, vector<1x32xf32>,
    return
  }
}

</mosaic_0001>

<bundles_post_ra>
// kernel: tpu_custom_call.1
= control target key start
LH: loop header
LB: loop body
LE: loop exit
PB: predicated region body
PF: predicated region fallthrough
CT: control target
= control target key end

     0   :  { %14 = vsyncpa [#allocation3], 0  ;;  %s472_s0 = inlined_call_operand.hbm [shape: f32[2,8,32], index: 0, kind: input, shape index: {}]   ;;  %s473_s1 = inlined_call_operand.vmem [shape: f32[2,1], index: 1, kind: input, shape index: {}]   ;;  %s474_s2 = inlined_call_operand.vmem [shape: f32[1,32], index: 2, kind: input, shape index: {}]   ;;  %s475_s3 = inlined_call_operand.vmem [shape: f32[1,32], index: 3, kind: input, shape index: {}]   ;;  %s476_s4 = inlined_call_operand.vmem [shape: f32[1,32], index: 4, kind: input, shape index: {}]   ;;  %s477_s5 = inlined_call_operand.vmem [shape: f32[1,32], index: 5, kind: input, shape index: {}]   ;;  %s478_s6 = inlined_call_operand.hbm [shape: f32[2,8,32], index: 6, kind: output, shape index: {0}]   ;;  %s479_s7 = inlined_call_operand.hbm [shape: f32[1,32], index: 7, kind: output, shape index: {1}]   ;;  %s480_s8 = inlined_call_operand.hbm [shape: f32[1,32], index: 8, kind: output, shape index: {2}]  }
   0x1   :  { %15 = vsyncpa [#allocation4], 0 }
   0x2   :  { %16 = vsyncpa [#allocation7], 0  ;;  %s319_s27 = smov [#allocation2]   ;;  %s225_s9 = scalar_lea.hbm %s472_s0, 256 }
   0x3   :  { %s22_s28 = sshll.u32 %s319_s27, 4  ;;  %p226_p0 = scmp.ne.s32.totalorder %s472_s0, %s225_s9  ;;  %s23_s28 = int_to_ptr.vmem [resolvable:$true] %s22_s28 }
   0x4   :  { %p229_p1 = scmp.lt.u32.totalorder %s225_s9, %s472_s0 }
   0x6   :  { %p231_p2 = pnand %p229_p1, %p226_p0 }
   0x8   :  { %234 = shalt.err (!%p231_p2)
}
   0x9   :  { %s235_s14 = scalar_lea.vmem %s23_s28, 256  ;;  %p240_p4 = scmp.lt.s32.totalorder %s23_s28, %s23_s28 }
   0xa   :  { %p236_p3 = scmp.ne.s32.totalorder %s23_s28, %s235_s14  ;;  %p241_p5 = scmp.lt.s32.totalorder %s235_s14, %s235_s14 }
   0xc   :  { %p242_p6 = por %p241_p5, %p240_p4 }
   0xe   :  { %p243_p7 = pnand %p242_p6, %p236_p3 }
  0x10   :  { %246 = shalt.err (!%p243_p7)
}
  0x11   :  { %s320_s15 = smov 128   ;;  %s321_s16 = smov 8  }
  0x12   :  { %28 = dma.hbm_to_vmem [thread:$0]  %s472_s0, 256, %s23_s28, [#allocation3], %s320_s15, %s320_s15, %s321_s16  }
  0x13   :  { %313 = dma.done.wait [#allocation3], 256  }
  0x14   :  { %314 = vsyncadd [#allocation3], 4294967040  ;;  %v322_v0 = vmov 0   ;;  %v44_v1 = vld [vmem:[%s473_s1] sm:$0x3]  ;;  %v43_v4 = vld [vmem:[#allocation2 + $0x8] sm:$0xff]  ;;  %v88_v28 = vlaneseq }
  0x15   :  { %218 = vset.pattern.permute.xlu0 %v322_v0  ;;  %v45_v2 = vadd.f32 1e-08, %v44_v1  ;;  %vm48_vm0 = vcmask 261120   ;;  %v42_v5 = vld [vmem:[#allocation2] sm:$0xff]  ;;  %vm75_vm1 = vcmask 1041409   ;;  %vm78_vm2 = vcmask 254976  }
  0x16   :  { %v56_v6 = vsel %vm48_vm0, %v43_v4, 0.0  ;;  %v49_v7 = vsel %vm48_vm0, %v42_v5, 0.0  ;;  %v89_v31 = vshrl.u32 %v88_v28, 7  ;;  %v157_v34 = vld [vmem:[%s476_s4] sm:$0x1]  ;;  %s323_s21 = smov [#allocation6]  }
  0x17   :  { %219 = vrcp.f32 %v45_v2  ;;  %v57_v8 = vrot.slane %v56_v6, 4  ;;  %v50_v9 = vrot.slane %v49_v7, 4  ;;  %v158_v38 = vmul.f32 0.9, %v157_v34  ;;  %s185_s22 = sshll.u32 %s323_s21, 4  ;;  %s186_s22 = int_to_ptr.vmem [resolvable:$true] %s185_s22 }
  0x18   :  { %v400_v35 = vsub.s32 0, %v89_v31  ;;  %vm160_vm3 = vcmask 253952   ;;  %s247_s4 = scalar_lea.vmem %s186_s22, 16  ;;  %s251_s23 = scalar_lea.vmem %s186_s22, 32 }
  0x19   :  { %v58_v10 = vadd.f32 %v57_v8, %v56_v6  ;;  %v51_v11 = vadd.f32 %v50_v9, %v49_v7  ;;  %p248_p8 = scmp.ne.s32.totalorder %s186_s22, %s247_s4  ;;  %p252_p9 = scmp.lt.s32.totalorder %s186_s22, %s186_s22 }
  0x1a   :  { %p253_p10 = scmp.lt.s32.totalorder %s251_s23, %s247_s4 }
  0x1b   :  { %v59_v12 = vrot.slane %v58_v10, 2  ;;  %v52_v13 = vrot.slane %v51_v11, 2 }
  0x1c   :  { %p254_p11 = por %p253_p10, %p252_p9 }
  0x1d   :  { %v60_v14 = vadd.f32 %v59_v12, %v58_v10  ;;  %v53_v15 = vadd.f32 %v52_v13, %v51_v11 }
  0x1e   :  { %p255_p12 = pnand %p254_p11, %p248_p8 }
  0x1f   :  { %v61_v16 = vrot.slane %v60_v14, 1  ;;  %v54_v17 = vrot.slane %v53_v15, 1 }
  0x21   :  { %v220_v3 = vpop.eup %219  ;;  %v62_v18 = vadd.f32 %v61_v16, %v60_v14  ;;  %v55_v20 = vadd.f32 %v54_v17, %v53_v15 }
  0x22   :  { %65 = vperm.xlu0 %218, %v220_v3  }
  0xa1   :  { %v391_v19 = vpop.permute.xlu0 %65 }
  0xa2   :  { %v67_v21 = vrot.slane %v391_v19, 1  ;;  %v70_v23 = vmul.f32 %v391_v19, %v55_v20 }
  0xa4   :  { %v71_v22 = vmul.f32 %v67_v21, %v62_v18 }
  0xa6   :  { %v74_v24 = vrot.slane %v71_v22, 7 }
  0xa8   :  { %v76_v25 = vsel %vm75_vm1, %v74_v24, %v70_v23 }
  0xa9   :  { %v79_v26 = vsel %vm78_vm2, %v76_v25, 0.0 }
  0xaa   :  { %v80_v27 = vrot.slane %v79_v26, 4 }
  0xac   :  { %v81_v29 = vadd.f32 %v80_v27, %v79_v26 }
  0xae   :  { %v82_v30 = vrot.slane %v81_v29, 2 }
  0xb0   :  { %v83_v32 = vadd.f32 %v82_v30, %v81_v29 }
  0xb2   :  { %v84_v33 = vrot.slane %v83_v32, 1 }
  0xb4   :  { %v85_v36 = vadd.f32 %v84_v33, %v83_v32 }
  0xb6   :  { %v87_v37 = vmul.f32 0.5, %v85_v36 }
  0xb8   :  { %v91_v39 = vrot.slane %v87_v37, %v400_v35  ;;  %v156_v40 = vmul.f32 0.1, %v87_v37 }
  0xba   :  { %v403_v41 = vsub.f32 %v42_v5, %v91_v39  ;;  %v405_v42 = vsub.f32 %v43_v4, %v91_v39  ;;  %v159_v43 = vadd.f32 %v158_v38, %v156_v40 }
  0xbc   :  { %v94_v44 = vmul.f32 %v403_v41, %v403_v41  ;;  %v95_v45 = vmul.f32 %v405_v42, %v405_v42  ;;  %161 = vst.msk [vmem:[#allocation6] sm:$0x1] %vm160_vm3, %v159_v43 }
  0xbd   :  { %258 = shalt.err (!%p255_p12)
}
  0xbe   :  { %s259_s26 = scalar_lea.hbm %s479_s7, 16 }
  0xbf   :  { %p260_p13 = scmp.ne.s32.totalorder %s479_s7, %s259_s26  ;;  %p263_p0 = scmp.lt.u32.totalorder %s259_s26, %s479_s7 }
  0xc1   :  { %p265_p1 = pnand %p263_p0, %p260_p13 }
  0xc3   :  { %268 = shalt.err (!%p265_p1)
}
  0xc4   :  { %188 = dma.vmem_to_hbm [thread:$0]  %s186_s22, 16, %s479_s7, [#allocation7]   ;;  %v96_v46 = vsel %vm48_vm0, %v94_v44, 0.0  ;;  %v103_v47 = vsel %vm48_vm0, %v95_v45, 0.0  ;;  %v163_v7 = vld [vmem:[%s477_s5] sm:$0x1] }
  0xc5   :  { %v97_v48 = vrot.slane %v96_v46, 4  ;;  %v104_v49 = vrot.slane %v103_v47, 4  ;;  %v164_v9 = vmul.f32 0.9, %v163_v7  ;;  %s324_s12 = smov [#allocation8]  }
  0xc6   :  { %s195_s13 = sshll.u32 %s324_s12, 4  ;;  %s196_s13 = int_to_ptr.vmem [resolvable:$true] %s195_s13 }
  0xc7   :  { %v98_v50 = vadd.f32 %v97_v48, %v96_v46  ;;  %v105_v51 = vadd.f32 %v104_v49, %v103_v47  ;;  %s269_s14 = scalar_lea.vmem %s196_s13, 16  ;;  %s273_s17 = scalar_lea.vmem %s196_s13, 32 }
  0xc8   :  { %p270_p2 = scmp.ne.s32.totalorder %s196_s13, %s269_s14  ;;  %p274_p3 = scmp.lt.s32.totalorder %s196_s13, %s196_s13 }
  0xc9   :  { %v99_v52 = vrot.slane %v98_v50, 2  ;;  %v106_v53 = vrot.slane %v105_v51, 2  ;;  %p275_p4 = scmp.lt.s32.totalorder %s273_s17, %s269_s14 }
  0xcb   :  { %v100_v54 = vadd.f32 %v99_v52, %v98_v50  ;;  %v107_v55 = vadd.f32 %v106_v53, %v105_v51  ;;  %p276_p5 = por %p275_p4, %p274_p3 }
  0xcd   :  { %v101_v56 = vrot.slane %v100_v54, 1  ;;  %v108_v57 = vrot.slane %v107_v55, 1  ;;  %p277_p6 = pnand %p276_p5, %p270_p2 }
  0xcf   :  { %v102_v58 = vadd.f32 %v101_v56, %v100_v54  ;;  %v109_v59 = vadd.f32 %v108_v57, %v107_v55 }
  0xd1   :  { %v111_v60 = vmul.f32 %v109_v59, %v67_v21  ;;  %v110_v61 = vmul.f32 %v102_v58, %v391_v19 }
  0xd3   :  { %v114_v62 = vrot.slane %v111_v60, 7 }
  0xd5   :  { %v115_v63 = vsel %vm75_vm1, %v114_v62, %v110_v61 }
  0xd6   :  { %v117_v0 = vsel %vm78_vm2, %v115_v63, 0.0 }
  0xd7   :  { %v118_v1 = vrot.slane %v117_v0, 4 }
  0xd9   :  { %v119_v2 = vadd.f32 %v118_v1, %v117_v0 }
  0xdb   :  { %v120_v3 = vrot.slane %v119_v2, 2 }
  0xdd   :  { %v121_v4 = vadd.f32 %v120_v3, %v119_v2 }
  0xdf   :  { %v122_v5 = vrot.slane %v121_v4, 1 }
  0xe1   :  { %v123_v6 = vadd.f32 %v122_v5, %v121_v4 }
  0xe3   :  { %v124_v8 = vmul.f32 0.5, %v123_v6 }
  0xe5   :  { %221 = vrsqrt.f32 %v124_v8  ;;  %v162_v10 = vmul.f32 0.1, %v124_v8 }
  0xe7   :  { %v165_v11 = vadd.f32 %v164_v9, %v162_v10 }
  0xe9   :  { %166 = vst.msk [vmem:[#allocation8] sm:$0x1] %vm160_vm3, %v165_v11 }
  0xea   :  { %280 = shalt.err (!%p277_p6)
}
  0xeb   :  { %s281_s19 = scalar_lea.hbm %s480_s8, 16 }
  0xec   :  { %p282_p7 = scmp.ne.s32.totalorder %s480_s8, %s281_s19  ;;  %p285_p8 = scmp.lt.u32.totalorder %s281_s19, %s480_s8 }
  0xee   :  { %p287_p9 = pnand %p285_p8, %p282_p7 }
  0xf0   :  { %290 = shalt.err (!%p287_p9)
}
  0xf1   :  { %198 = dma.vmem_to_hbm [thread:$0]  %s196_s13, 16, %s480_s8, [#allocation7]   ;;  %v222_v12 = vpop.eup %221  ;;  %vm128_vm4 = vcmp.eq.f32.partialorder %v124_v8, inf  ;;  %v131_v14 = vand.u32 2147483648, %v124_v8  ;;  %vm130_vm5 = vcmp.eq.f32.partialorder %v124_v8, 0.0 }
  0xf2   :  { %v127_v13 = vmul.f32 %v222_v12, %v124_v8  ;;  %v136_v18 = vld [vmem:[%s474_s2] sm:$0x1]  ;;  %s325_s8 = smov [#allocation5]  }
  0xf3   :  { %v125_v19 = vld [vmem:[%s475_s3] sm:$0x1]  ;;  %s172_s27 = sshll.u32 %s325_s8, 4  ;;  %s173_s27 = int_to_ptr.vmem [resolvable:$true] %s172_s27 }
  0xf4   :  { %v129_v15 = vsel %vm128_vm4, %v124_v8, %v127_v13  ;;  %v137_v20 = vmul.f32 %v136_v18, %v125_v19  ;;  %s291_s2 = scalar_lea.vmem %s173_s27, 256  ;;  %p296_p11 = scmp.lt.s32.totalorder %s173_s27, %s173_s27 }
  0xf5   :  { %v132_v16 = vsel %vm130_vm5, %v131_v14, %v129_v15  ;;  %p292_p10 = scmp.ne.s32.totalorder %s173_s27, %s291_s2  ;;  %p297_p12 = scmp.lt.s32.totalorder %s291_s2, %s291_s2 }
  0xf6   :  { %v133_v17 = vadd.f32 1e-08, %v132_v16  ;;  %v150_v24 = vrot.slane %v137_v20, %v400_v35 }
  0xf7   :  { %p298_p13 = por %p297_p12, %p296_p11 }
  0xf8   :  { %223 = vrcp.f32 %v133_v17 }
  0xf9   :  { %p299_p0 = pnand %p298_p13, %p292_p10 }
 0x102   :  { %v224_v21 = vpop.eup %223 }
 0x103   :  { %v135_v22 = vmul.f32 %v224_v21, %v125_v19 }
 0x105   :  { %v142_v23 = vrot.slane %v135_v22, %v400_v35 }
 0x107   :  { %v144_v25 = vmul.f32 %v142_v23, %v403_v41  ;;  %v145_v26 = vmul.f32 %v142_v23, %v405_v42 }
 0x109   :  { %v152_v27 = vadd.f32 %v150_v24, %v144_v25  ;;  %v153_v28 = vadd.f32 %v150_v24, %v145_v26 }
 0x10b   :  { %154 = vst.msk [vmem:[#allocation5] sm:$0xff] %vm48_vm0, %v152_v27  ;;  %155 = vst.msk [vmem:[#allocation5 + $0x8] sm:$0xff] %vm48_vm0, %v153_v28 }
 0x10c   :  { %302 = shalt.err (!%p299_p0)
}
 0x10d   :  { %s303_s29 = scalar_lea.hbm %s478_s6, 256 }
 0x10e   :  { %p304_p1 = scmp.ne.s32.totalorder %s478_s6, %s303_s29  ;;  %p307_p2 = scmp.lt.u32.totalorder %s303_s29, %s478_s6 }
 0x110   :  { %p309_p3 = pnand %p307_p2, %p304_p1 }
 0x112   :  { %312 = shalt.err (!%p309_p3)
}
 0x113   :  { %178 = dma.vmem_to_hbm [thread:$0]  %s173_s27, 256, %s478_s6, [#allocation4], %s320_s15, %s320_s15, %s321_s16  }
 0x114   :  { %315 = dma.done.wait [#allocation4], 256  }
 0x115   :  { %316 = vsyncadd [#allocation4], 4294967040 }
 0x116   :  { %317 = dma.done.wait [#allocation7], 32  }
 0x117   :  { %318 = vsyncadd [#allocation7], 4294967264 }
 0x118   :  { %208 = vsyncpa [#allocation3], 1 }
 0x119   :  { %209 = vsyncpa [#allocation4], 1 }
 0x11a   :  { %210 = vsyncpa [#allocation7], 1 }

</bundles_post_ra>
